<compile_context>
chip_gen: v6e
topology: v6e:2x2x1
jax: 0.10.0
libtpu: 0.0.40
codegen_flags: <defaults>
</compile_context>

<pallas_src>
import functools

import jax
import jax.numpy as jnp
from jax.experimental import pallas as pl
from jax.experimental.pallas import tpu as pltpu

_EPS = 1e-12            # torch F.normalize default eps
_EPS2 = _EPS * _EPS


# --------------------------------------------------------------------------
# Kernel body
# --------------------------------------------------------------------------
def _matching_kernel(*refs, cosine, ktiled, squeezed, precision):
    """Computes one (bt?, tm, tn) output tile.

    refs layout: x1, x2, [rn1, rn2], out, [f32 accumulator scratch].
    """
    if cosine:
        x1_ref, x2_ref, rn1_ref, rn2_ref, o_ref, *rest = refs
    else:
        x1_ref, x2_ref, o_ref, *rest = refs
        rn1_ref = rn2_ref = None
    acc_ref = rest[0] if ktiled else None

    # Contract the channel (last) dim of both operands directly ('NT'
    # orientation) -- no transpose / relayout of the x2 tile is needed.
    dims = ((((1,), (1,)), ((), ())) if squeezed
            else (((2,), (2,)), ((0,), (0,))))
    part = jax.lax.dot_general(
        x1_ref[...], x2_ref[...], dimension_numbers=dims,
        preferred_element_type=jnp.float32, precision=precision)

    def _finalize(acc):
        if cosine:
            # Precomputed inverse norms: pure VPU broadcast-multiplies.
            acc = acc * rn1_ref[...] * rn2_ref[...]
        o_ref[...] = acc.astype(o_ref.dtype)

    if not ktiled:
        _finalize(part)
    else:
        k = pl.program_id(3)

        @pl.when(k == 0)
        def _():
            acc_ref[...] = jnp.zeros_like(acc_ref)

        acc_ref[...] += part

        @pl.when(k == pl.num_programs(3) - 1)
        def _():
            _finalize(acc_ref[...])


# --------------------------------------------------------------------------
# Tiling heuristics
# --------------------------------------------------------------------------
def _vmem_budgets():
    """(working-set budget, default vmem_limit, hard cap) per TPU generation."""
    try:
        cap = int(getattr(pltpu.get_tpu_info(), "vmem_capacity_bytes", 0))
    except Exception:  # pragma: no cover - hardware query best-effort
        cap = 0
    if cap >= 96 << 20:
        # v5e / v6e: 128 MiB physical VMEM -- use it (v5e default scoped VMEM
        # is only 16 MiB, so the explicit vmem_limit_bytes is load-bearing).
        return 64 << 20, 96 << 20, 112 << 20
    # v7x (64 MiB per TensorCore) or unknown: conservative, valid everywhere.
    return 40 << 20, 52 << 20, 56 << 20


def _seq_tile_candidates(L):
    cands = {L}
    for t in (2048, 1024, 512, 256, 128):
        if t < L and L % t == 0:
            cands.add(t)
    return sorted(cands, reverse=True)


def _ws_bytes(tm, tn, kblk, C, in_bytes, out_bytes, cosine):
    """Per-grid-step double-buffered VMEM working set estimate."""
    ws = 2 * (tm + tn) * kblk * in_bytes        # x1 / x2 tiles (double-buffered)
    ws += 2 * tm * tn * out_bytes               # output tile (double-buffered)
    if kblk < C:
        ws += tm * tn * 4                       # f32 accumulator scratch
    if cosine:
        ws += 2 * (tm + tn) * 4                 # rn1 / rn2 tiles (noise)
    return ws


def _pick_tiles(L1, L2, C, in_bytes, out_bytes, budget, cosine):
    """Return (tm, tn, tk).  tk is None unless C itself must be tiled."""
    tm_cands = _seq_tile_candidates(L1)
    tn_cands = _seq_tile_candidates(L2)

    def fits(tm, tn, kblk):
        return _ws_bytes(tm, tn, kblk, C, in_bytes, out_bytes, cosine) <= budget

    # Pass 1 prefers tn >= 256 (v6e/v7x MXU is 2x 256x256); pass 2 allows any.
    passes = []
    big_tns = [t for t in tn_cands if t >= 256]
    if big_tns:
        passes.append(big_tns)
    passes.append(tn_cands)

    # Maximize tm first: with j innermost the x1 tile is VMEM-resident across
    # j, and x2 is re-streamed (L1/tm) times -- tm controls HBM traffic; tn
    # does not.  Then take the largest tn that fits (fewer steps, full MXU).
    for tns in passes:
        for tm in tm_cands:
            for tn in tns:
                if fits(tm, tn, C):
                    return tm, tn, None

    # Full-C operand tiles bust the budget: tile the reduction (C) axis too.
    tk_cands = [t for t in (512, 256, 128) if t < C and C % t == 0]
    if tk_cands:
        for tns in passes:
            for tm in tm_cands:
                for tn in tns:
                    for tk in tk_cands:
                        if fits(tm, tn, tk):
                            return tm, tn, tk

    # TODO(synk): huge C not divisible by 128 -- fall back to the smallest
    # full-C tiles; vmem_limit_bytes is raised to cover the working set.
    return tm_cands[-1], tn_cands[-1], None


def _pick_batch_block(B, L1, L2, C, tm, tn, tk, in_bytes, out_bytes, budget):
    """Pack batches per grid step only for tiny, whole-extent problems."""
    if tm != L1 or tn != L2 or tk is not None or B == 1:
        return 1
    per_b_macs = L1 * L2 * C
    per_b_bytes = 2 * (L1 + L2) * C * in_bytes + 2 * L1 * L2 * out_bytes
    target_macs = 256 * 256 * 256       # ~ one grid-step overhead of MXU work
    cap = min(budget // max(per_b_bytes, 1), target_macs // max(per_b_macs, 1))
    cap = min(cap, B // 2)              # keep >= 2 grid steps (v7x: 2 TCs)
    cap = max(1, min(B, cap))
    for d in range(cap, 0, -1):
        if B % d == 0:
            return d
    return 1


def _ensure_min_grid_steps(B, bt, L1, tm, L2, tn):
    """Guarantee >= 2 parallel grid steps when possible (v7x has 2 TCs)."""
    if (B // bt) * (L1 // tm) * (L2 // tn) >= 2:
        return bt, tm, tn
    if B >= 2:                                   # splitting batch costs nothing
        for d in range(B // 2, 0, -1):
            if B % d == 0:
                return d, tm, tn
    for t in (2048, 1024, 512, 256, 128, 64, 32, 16, 8):   # then split L1
        if t < tm and L1 % t == 0:
            return bt, t, tn
    for t in (2048, 1024, 512, 256, 128):                   # then split L2
        if t < tn and L2 % t == 0:
            return bt, tm, t
    return bt, tm, tn        # genuinely a single-tile problem


# --------------------------------------------------------------------------
# Public wrapper
# --------------------------------------------------------------------------
def matching_layer(x1: jax.Array, x2: jax.Array, matching_type: str = "dot",
                   *, tile_m=None, tile_n=None, tile_k=None, batch_block=None,
                   precision=None) -> jax.Array:
    """Pallas TPU implementation of MatchingLayer.forward.

    x1: [B, L1, C], x2: [B, L2, C] -> [B, L1, L2]
    """
    if matching_type not in ("dot", "cos"):
        raise ValueError(f"Matching type of {matching_type} is not supported yet !")
    B, L1, C = x1.shape
    B2, L2, C2 = x2.shape
    if B != B2 or C != C2:
        raise ValueError("x1/x2 batch or channel dims do not match")
    cosine = matching_type == "cos"

    out_dtype = jnp.result_type(x1.dtype, x2.dtype)
    if x1.dtype != out_dtype:
        x1 = x1.astype(out_dtype)
    if x2.dtype != out_dtype:
        x2 = x2.astype(out_dtype)

    in_bytes = jnp.dtype(out_dtype).itemsize
    out_bytes = in_bytes
    budget, vmem_limit, vmem_cap = _vmem_budgets()

    tm, tn, tk = _pick_tiles(L1, L2, C, in_bytes, out_bytes, budget, cosine)
    bt = _pick_batch_block(B, L1, L2, C, tm, tn, tk, in_bytes, out_bytes, budget)
    bt, tm, tn = _ensure_min_grid_steps(B, bt, L1, tm, L2, tn)

    # User overrides (tests / benchmarking).
    if tile_m is not None:
        tm = tile_m
    if tile_n is not None:
        tn = tile_n
    if tile_k is not None:
        tk = tile_k
    if batch_block is not None:
        bt = batch_block
    assert B % bt == 0 and L1 % tm == 0 and L2 % tn == 0
    assert tk is None or C % tk == 0

    kblk = C if tk is None else tk
    ws = bt * _ws_bytes(tm, tn, kblk, C, in_bytes, out_bytes, cosine)
    vmem_limit = int(min(vmem_cap, max(vmem_limit, ws + (8 << 20))))

    squeezed = bt == 1
    bdim = None if squeezed else bt          # None == squeeze unit batch dim

    inputs = [x1, x2]
    if cosine:
        # Precompute inverse norms once (tiny arrays); streamed per tile.
        x1f = x1.astype(jnp.float32)
        x2f = x2.astype(jnp.float32)
        ss1 = jnp.sum(x1f * x1f, axis=-1, keepdims=True)            # (B, L1, 1)
        ss2 = jnp.sum(x2f * x2f, axis=-1)                           # (B, L2)
        rn1 = jax.lax.rsqrt(jnp.maximum(ss1, _EPS2))                # (B, L1, 1)
        rn2 = jax.lax.rsqrt(jnp.maximum(ss2, _EPS2))[:, None, :]    # (B, 1, L2)
        inputs += [rn1, rn2]

    if tk is None:
        grid = (B // bt, L1 // tm, L2 // tn)
        in_specs = [
            pl.BlockSpec((bdim, tm, C), lambda b, i, j: (b, i, 0)),
            pl.BlockSpec((bdim, tn, C), lambda b, i, j: (b, j, 0)),
        ]
        if cosine:
            in_specs += [
                pl.BlockSpec((bdim, tm, 1), lambda b, i, j: (b, i, 0)),
                pl.BlockSpec((bdim, 1, tn), lambda b, i, j: (b, 0, j)),
            ]
        out_specs = pl.BlockSpec((bdim, tm, tn), lambda b, i, j: (b, i, j))
        scratch_shapes = []
        # No reduction axis: every step writes a distinct tile -> all parallel.
        dim_sem = ("parallel", "parallel", "parallel")
    else:
        grid = (B // bt, L1 // tm, L2 // tn, C // tk)
        in_specs = [
            pl.BlockSpec((bdim, tm, tk), lambda b, i, j, k: (b, i, k)),
            pl.BlockSpec((bdim, tn, tk), lambda b, i, j, k: (b, j, k)),
        ]
        if cosine:
            in_specs += [
                pl.BlockSpec((bdim, tm, 1), lambda b, i, j, k: (b, i, 0)),
                pl.BlockSpec((bdim, 1, tn), lambda b, i, j, k: (b, 0, j)),
            ]
        out_specs = pl.BlockSpec((bdim, tm, tn), lambda b, i, j, k: (b, i, j))
        acc_shape = (tm, tn) if squeezed else (bt, tm, tn)
        scratch_shapes = [pltpu.VMEM(acc_shape, jnp.float32)]
        # Reduction (C) axis last, marked arbitrary; output tile stays resident.
        dim_sem = ("parallel", "parallel", "parallel", "arbitrary")

    kernel = functools.partial(
        _matching_kernel, cosine=cosine, ktiled=(tk is not None),
        squeezed=squeezed, precision=precision)

    return pl.pallas_call(
        kernel,
        out_shape=jax.ShapeDtypeStruct((B, L1, L2), out_dtype),
        grid_spec=pltpu.PrefetchScalarGridSpec(
            num_scalar_prefetch=0,
            grid=grid,
            in_specs=in_specs,
            out_specs=out_specs,
            scratch_shapes=scratch_shapes,
        ),
        compiler_params=pltpu.CompilerParams(
            dimension_semantics=dim_sem,
            vmem_limit_bytes=vmem_limit,
        ),
    )(*inputs)


# --------------------------------------------------------------------------
# Reference + self-test
# --------------------------------------------------------------------------
def _reference(x1, x2, matching_type):
    if matching_type == "cos":
        x1 = x1 / jnp.maximum(jnp.linalg.norm(x1, axis=-1, keepdims=True), _EPS)
        x2 = x2 / jnp.maximum(jnp.linalg.norm(x2, axis=-1, keepdims=True), _EPS)
    return jnp.einsum("abd,acd->abc", x1, x2)


if __name__ == "__main__":
    key = jax.random.PRNGKey(0)
    k1, k2, k3, k4, k5, k6, k7, k8 = jax.random.split(key, 8)

    ok = True

    # 1) Tiny docstring shapes (squeezed batch dim, full-extent tiles).
    B, L1, L2, C = 2, 8, 8, 32
    x1 = jax.random.normal(k1, (B, L1, C), dtype=jnp.float32)
    x2 = jax.random.normal(k2, (B, L2, C), dtype=jnp.float32)
    for mtype in ("dot", "cos"):
        out = jax.block_until_ready(matching_layer(x1, x2, matching_type=mtype))
        ref = _reference(x1, x2, mtype)
        ok &= out.shape == (B, L1, L2)
        ok &= bool(jnp.allclose(out, ref, atol=1e-5, rtol=1e-5))

    # 2) Tiled (b, i, j) grid with forced tiles, plus the auto-picked config.
    B, L1, L2, C = 2, 256, 256, 64
    y1 = jax.random.normal(k3, (B, L1, C), dtype=jnp.float32)
    y2 = jax.random.normal(k4, (B, L2, C), dtype=jnp.float32)
    for mtype in ("dot", "cos"):
        ref = _reference(y1, y2, mtype)
        out = jax.block_until_ready(
            matching_layer(y1, y2, matching_type=mtype,
                           tile_m=128, tile_n=128, batch_block=1))
        ok &= bool(jnp.allclose(out, ref, atol=1e-4, rtol=1e-4))
        out = jax.block_until_ready(matching_layer(y1, y2, matching_type=mtype))
        ok &= bool(jnp.allclose(out, ref, atol=1e-4, rtol=1e-4))

    # 3) K-tiled (reduction-axis) path with an f32 VMEM accumulator.
    B, L1, L2, C = 2, 128, 128, 256
    z1 = jax.random.normal(k5, (B, L1, C), dtype=jnp.float32)
    z2 = jax.random.normal(k6, (B, L2, C), dtype=jnp.float32)
    for mtype in ("dot", "cos"):
        out = jax.block_until_ready(
            matching_layer(z1, z2, matching_type=mtype, tile_k=128))
        ref = _reference(z1, z2, mtype)
        ok &= bool(jnp.allclose(out, ref, atol=1e-4, rtol=1e-4))

    # 4) Batch-packed path (bt > 1) on tiny per-batch work.
    B, L1, L2, C = 8, 8, 8, 32
    w1 = jax.random.normal(k7, (B, L1, C), dtype=jnp.float32)
    w2 = jax.random.normal(k8, (B, L2, C), dtype=jnp.float32)
    for mtype in ("dot", "cos"):
        out = jax.block_until_ready(matching_layer(w1, w2, matching_type=mtype))
        ref = _reference(w1, w2, mtype)
        ok &= bool(jnp.allclose(out, ref, atol=1e-5, rtol=1e-5))

    # 5) bf16 smoke test (native-dtype MXU feed, f32 accumulation).
    v1 = y1.astype(jnp.bfloat16)
    v2 = y2.astype(jnp.bfloat16)
    for mtype in ("dot", "cos"):
        out = jax.block_until_ready(matching_layer(v1, v2, matching_type=mtype))
        ref = _reference(v1.astype(jnp.float32), v2.astype(jnp.float32), mtype)
        ok &= bool(jnp.allclose(out.astype(jnp.float32), ref, atol=0.5, rtol=0.05))

    if ok:
        print("KERNEL_OK")
</pallas_src>

<mosaic_0001>
module attributes {stable_mosaic.version = 11 : i64} {
  func.func @_matching_kernel(%arg0: i32, %arg1: i32, %arg2: i32, %arg3: memref<1x8x32xf32, #tpu.memory_space<vmem>>, %arg4: memref<1x8x32xf32, #tpu.memory_space<vmem>>, %arg5: memref<1x8x8xf32, #tpu.memory_space<vmem>>) attributes {dimension_semantics = [#tpu.dimension_semantics<parallel>, #tpu.dimension_semantics<parallel>, #tpu.dimension_semantics<parallel>], iteration_bounds = array<i64: 2, 1, 1>, scalar_prefetch = 0 : i64, scratch_operands = 0 : i64, tpu.core_type = #tpu.core_type<tc>, window_params = [{transform_indices = @transform_0, window_bounds = array<i64: 1, 8, 32>}, {transform_indices = @transform_1, window_bounds = array<i64: 1, 8, 32>}, {transform_indices = @transform_2, window_bounds = array<i64: 1, 8, 8>}]} {
    %c0 = arith.constant 0 : index
    %c0_0 = arith.constant 0 : index
    %c0_1 = arith.constant 0 : index
    %0 = vector.load %arg3[%c0, %c0_0, %c0_1] : memref<1x8x32xf32, #tpu.memory_space<vmem>>, vector<1x8x32xf32>
    %1 = vector.shape_cast %0 : vector<1x8x32xf32> to vector<8x32xf32>
    %c0_2 = arith.constant 0 : index
    %c0_3 = arith.constant 0 : index
    %c0_4 = arith.constant 0 : index
    %2 = vector.load %arg4[%c0_2, %c0_3, %c0_4] : memref<1x8x32xf32, #tpu.memory_space<vmem>>, vector<1x8x32xf32>
    %3 = vector.shape_cast %2 : vector<1x8x32xf32> to vector<8x32xf32>
    %cst = arith.constant dense<0.000000e+00> : vector<8x8xf32>
    %4 = tpu.matmul %1, %3, %cst {dimension_numbers = #tpu.dot_dimension_numbers<[1], [1], [0], [0], [0, 0, 1, 0], [], []>} : vector<8x32xf32>, vector<8x32xf32>, vector<8x8xf32> -> vector<8x8xf32>
    %c0_5 = arith.constant 0 : index
    %c0_6 = arith.constant 0 : index
    %c0_7 = arith.constant 0 : index
    %5 = vector.load %arg5[%c0_5, %c0_6, %c0_7] : memref<1x8x8xf32, #tpu.memory_space<vmem>>, vector<1x8x8xf32>
    %6 = vector.shape_cast %5 : vector<1x8x8xf32> to vector<8x8xf32>
    %7 = vector.shape_cast %4 : vector<8x8xf32> to vector<1x8x8xf32>
    tpu.vector_store %arg5[%c0_5, %c0_6, %c0_7], %7 {strides = array<i32>} : memref<1x8x8xf32, #tpu.memory_space<vmem>>, vector<1x8x8xf32>,
    return
  }
  func.func @transform_0(%arg0: i32, %arg1: i32, %arg2: i32) -> (i32, i32, i32) {
    %c0_i32 = arith.constant 0 : i32
    %c0_i32_0 = arith.constant 0 : i32
    return %arg0, %arg1, %c0_i32 : i32, i32, i32
  }
  func.func @transform_1(%arg0: i32, %arg1: i32, %arg2: i32) -> (i32, i32, i32) {
    %c0_i32 = arith.constant 0 : i32
    %c0_i32_0 = arith.constant 0 : i32
    return %arg0, %arg2, %c0_i32 : i32, i32, i32
  }
  func.func @transform_2(%arg0: i32, %arg1: i32, %arg2: i32) -> (i32, i32, i32) {
    %c0_i32 = arith.constant 0 : i32
    return %arg0, %arg1, %arg2 : i32, i32, i32
  }
}

</mosaic_0001>

<bundles_post_ra>
// kernel: tpu_custom_call.1
= control target key start
LH: loop header
LB: loop body
LE: loop exit
PB: predicated region body
PF: predicated region fallthrough
CT: control target
= control target key end

     0   :  { %7 = vsyncpa [#allocation3], 0  ;;  %s859_s0 = inlined_call_operand.hbm [shape: f32[2,8,32], index: 0, kind: input, shape index: {}]   ;;  %s860_s1 = inlined_call_operand.hbm [shape: f32[2,8,32], index: 1, kind: input, shape index: {}]   ;;  %s861_s2 = inlined_call_operand.hbm [shape: f32[2,8,8], index: 2, kind: output, shape index: {}]  }
   0x1   :  { %9 = vsyncpa [#allocation3 + $0x1], 0 }
   0x2   :  { %10 = vsyncpa [#allocation6], 0 }
   0x3   :  { %12 = vsyncpa [#allocation6 + $0x1], 0 }
   0x4   :  { %13 = vsyncpa [#allocation4], 0 }
   0x5   :  { %15 = vsyncpa [#allocation4 + $0x1], 0  ;;  %s686_s9 = smov 0   ;;  %s688_s10 = smov 0  }
   0x6   :  { %s690_s11 = smov 0   ;;  %s692_s12 = smov 0  }
   0x7   :  { %s694_s13 = smov 0   ;;  %s696_s14 = smov 0  }
   0x8 LB: > { %s430_s15 = sadd.s32 4294967295, %s664_s14   ;;  %s431_s16 = sadd.s32 4294967294, %s664_s14   ;;  %s664_s14 = sphi %s696_s14, %s21_s14   ;;  %s660_s13 = sphi %s694_s13, %s873_s13   ;;  %s656_s12 = sphi %s692_s12, %s872_s12   ;;  %s652_s11 = sphi %s690_s11, %s871_s11   ;;  %s648_s10 = sphi %s688_s10, %s870_s10   ;;  %s644_s9 = sphi %s686_s9, %s869_s9  }
   0x9   : > { %s40_s17 = sadd.s32 1, %s660_s13  ;;  %s49_s18 = sadd.s32 1, %s652_s11 }
   0xa   : > { %p42_p0 = scmp.ge.s32.totalorder %s40_s17, 2  ;;  %p56_p1 = scmp.ne.s32.totalorder %s652_s11, %s648_s10 }
   0xb   : > { %p57_p2 = scmp.eq.s32.totalorder %s664_s14, 0  ;;  %p62_p3 = scmp.ne.s32.totalorder %s648_s10, %s644_s9 }
   0xc   : > { %s875_s17 = smov (%p42_p0, %s40_s17), 0  ;;  %p63_p5 = scmp.eq.s32.totalorder %s430_s15, 0 }
   0xd   : > { %p727_p4 = por %p57_p2, %p56_p1  ;;  %s44_s20 = ssub.s32 %s660_s13, %s875_s17 }
   0xe   : > { %p118_p6 = scmp.eq.s32.totalorder %s430_s15, 1  ;;  %p47_p7 = scmp.eq.s32.totalorder %s44_s20, 0 }
   0xf   : > { %p733_p8 = por %p63_p5, %p62_p3  ;;  %p124_p10 = scmp.eq.s32.totalorder %s431_s16, 1 }
  0x10   : > { %p737_p9 = por %p118_p6, %p56_p1  ;;  %p472_p13 = scmp.lt.s32.totalorder %s664_s14, 2 }
  0x11   : > { %s742_s23 = scalar_select %p47_p7, %s652_s11, %s49_s18  }
  0x12   : > { %p744_p11 = por %p124_p10, %p62_p3  ;;  %s751_s25 = sand.u32 1, %s652_s11  }
  0x13   : > { %s434_s26 = sshll.u32 %s751_s25, 3  ;;  %s435_s27 = sshll.u32 %s660_s13, 7 }
  0x14   : > { %s154_s30 = scalar_lea.hbm %s859_s0, %s435_s27  ;;  %s148_s3 = scalar_lea.vmem [#allocation2], %s434_s26 }
  0x15   : > { %s156_s4 = sshll.u32 %s148_s3, 4  ;;  %p760_p0 = pnand %p472_p13, %p727_p4  ;;  %s157_s4 = int_to_ptr.vmem [resolvable:$true] %s156_s4 }
  0x16   : > { %p438_p1 = scmp.ge.s32.totalorder %s664_s14, 1  ;;  %p180_p2 = scmp.lt.s32.totalorder %s664_s14, 3 }
  0x17   : > { %s145_s6 = scalar_lea.sflag [#allocation3], %s751_s25  ;;  %p526_p3 = pneg %p760_p0 }
  0x18   : > { %s537_s7 = scalar_lea.vmem %s157_s4, 128  ;;  %s666_s8 = smov [#allocation2]  }
  0x19   : > { %p538_p5 = scmp.ne.s32.totalorder %s157_s4, %s537_s7  ;;  %s542_s15 = sshll.u32 %s666_s8, 4  ;;  %s543_s15 = int_to_ptr.vmem [resolvable:$false] %s542_s15 }
  0x1a   : > { %s544_s16 = scalar_lea.vmem %s543_s15, 256  ;;  %p545_p4 = scmp.lt.s32.totalorder %s157_s4, %s543_s15 }
  0x1b   : > { %p540_p6 = pnand %p538_p5, %p526_p3  ;;  %p546_p10 = scmp.lt.s32.totalorder %s544_s16, %s537_s7 }
  0x1d   : > { %p541_p7 = pneg %p540_p6  ;;  %p547_p13 = por %p546_p10, %p545_p4 }
  0x1f   : > { %p548_p12 = pnand %p547_p13, %p541_p7 }
  0x21   : > { %551 = shalt.err (!%p548_p12)
}
  0x22   : > { %464 = dma.hbm_to_vmem [thread:$0]  (!%p760_p0), %s154_s30, 128, %s157_s4, %s145_s6  }
  0x23   : > { %p778_p5 = pnand %p438_p1, %p180_p2  ;;  %s173_s28 = scalar_lea.hbm %s860_s1, %s435_s27 }
  0x24   : > { %s167_s29 = scalar_lea.vmem [#allocation5], %s434_s26  ;;  %s164_s7 = scalar_lea.sflag [#allocation6], %s751_s25 }
  0x25   : > { %s175_s3 = sshll.u32 %s167_s29, 4  ;;  %s667_s30 = smov [#allocation5]   ;;  %s176_s3 = int_to_ptr.vmem [resolvable:$true] %s175_s3 }
  0x26   : > { %s565_s8 = scalar_lea.vmem %s176_s3, 128  ;;  %s570_s4 = sshll.u32 %s667_s30, 4  ;;  %s571_s4 = int_to_ptr.vmem [resolvable:$false] %s570_s4 }
  0x27   : > { %p566_p12 = scmp.ne.s32.totalorder %s176_s3, %s565_s8  ;;  %s572_s6 = scalar_lea.vmem %s571_s4, 256 }
  0x28   : > { %p573_p1 = scmp.lt.s32.totalorder %s176_s3, %s571_s4  ;;  %p574_p2 = scmp.lt.s32.totalorder %s572_s6, %s565_s8 }
  0x29   : > { %p568_p6 = pnand %p566_p12, %p526_p3 }
  0x2a   : > { %p575_p4 = por %p574_p2, %p573_p1 }
  0x2b   : > { %p569_p7 = pneg %p568_p6 }
  0x2d   : > { %p576_p10 = pnand %p575_p4, %p569_p7 }
  0x2f   : > { %579 = shalt.err (!%p576_p10)
}
  0x30   : > { %467 = dma.hbm_to_vmem [thread:$0]  (!%p760_p0), %s173_s28, 128, %s176_s3, %s164_s7  }
  0x31   : > { %184 = sbr.rel (%p778_p5) target bundleno = 269 (0x10d), region = 28  ;;  %s794_s25 = sand.u32 (!%p778_p5), 1, %s648_s10  }
  0x32   : > { %s439_s26 = sshll.u32 (!%p778_p5), %s794_s25, 3  ;;  %s187_s27 = scalar_lea.sflag (!%p778_p5), [#allocation3], %s794_s25 }
  0x33   : > { %s190_s15 = scalar_lea.vmem (!%p778_p5), [#allocation2], %s439_s26 }
  0x36   : > { %631 = dma.done.wait (%p733_p8), %s187_s27, 128  }
  0x37   : > { %633 = vsyncadd (%p733_p8), %s187_s27, 4294967168  ;;  %s196_s5 = scalar_lea.sflag [#allocation6], %s794_s25  ;;  %s199_s16 = scalar_lea.vmem [#allocation5], %s439_s26 }
  0x38   : > { %635 = dma.done.wait (%p733_p8), %s196_s5, 128  }
  0x39   : > { %637 = vsyncadd (%p733_p8), %s196_s5, 4294967168  ;;  %v668_v0 = vmov 0.0   ;;  %vm669_vm0 = vmmov 0   ;;  %vm227_vm1 = vcmask 261120   ;;  %v226_v1 = vld [vmem:[%s199_s16] sm:$0xff]  ;;  %v225_v2 = vld [vmem:[%s190_s15] sm:$0xff] }
  0x3a   : > { %450 = vmatprep.subr.mxu0 %v668_v0  ;;  %452 = vmatprep.mubr.msk.f32.mxu0 %vm669_vm0, %v668_v0  ;;  %s445_s18 = sshll.u32 %s656_s12, 7  ;;  %s224_s19 = scalar_lea.vmem [#allocation7], %s439_s26  ;;  %vm304_vm2 = vcmask 64512  }
  0x3b   : > { %451 = vmatpush3.xpose.msk.msra.mxu0 %vm227_vm1, %v226_v1  ;;  %s322_s20 = sshll.u32 %s224_s19, 4  ;;  %s811_s21 = scalar_lea.hbm %s861_s2, %s445_s18  ;;  %s813_s20 = int_to_ptr.vmem [resolvable:$true] %s322_s20 }
  0x3c   : > { %s307_s3 = scalar_lea.sflag [#allocation4], %s794_s25  ;;  %s580_s7 = scalar_lea.vmem %s813_s20, 128 }
  0x3d   : > { %p581_p8 = scmp.ne.s32.totalorder %s813_s20, %s580_s7  ;;  %s670_s12 = smov [#allocation7]  }
  0x3e   : > { %453 = vmatmul.mubr.msk.f32.vlgmr.msra.gmra.mxu0 %vm227_vm1, %v225_v2  ;;  %s584_s8 = sshll.u32 %s670_s12, 4  ;;  %s585_s8 = int_to_ptr.vmem [resolvable:$false] %s584_s8 }
  0x3f   : > { %p582_p0 = pnand %p581_p8, %p737_p9  ;;  %s586_s30 = scalar_lea.vmem %s585_s8, 256 }
  0x40   : > { %p587_p13 = scmp.lt.s32.totalorder %s813_s20, %s585_s8  ;;  %p588_p5 = scmp.lt.s32.totalorder %s586_s30, %s580_s7 }
  0x41   : > { %p583_p3 = pneg %p582_p0 }
  0x42   : > { %p589_p12 = por %p588_p5, %p587_p13 }
  0x44   : > { %p590_p6 = pnand %p589_p12, %p583_p3 }
  0xfe   : > { %v300_v3 = vpop.f32.mrf.mxu0 }
  0xff   : > { %305 = vst.msk [vmem:[%s224_s19] sm:$0xff] %vm304_vm2, %v300_v3 }
 0x100   : > { %v454_v4 = vpop.f32.mrf.mxu0 }
 0x101   : > { %593 = shalt.err (!%p590_p6)
}
 0x102   : > { %s594_s4 = scalar_lea.hbm %s811_s21, 128  ;;  %s598_s26 = scalar_lea.hbm %s861_s2, 256 }
 0x103   : > { %p595_p7 = scmp.ne.s32.totalorder %s811_s21, %s594_s4  ;;  %p599_p4 = scmp.lt.s32.totalorder %s811_s21, %s861_s2 }
 0x104   : > { %p600_p10 = scmp.lt.s32.totalorder %s598_s26, %s594_s4 }
 0x105   : > { %p596_p1 = pnand %p595_p7, %p737_p9 }
 0x106   : > { %p601_p8 = por %p600_p10, %p599_p4 }
 0x107   : > { %p597_p2 = pneg %p596_p1 }
 0x109   : > { %p602_p0 = pnand %p601_p8, %p597_p2 }
 0x10b   : > { %605 = shalt.err (!%p602_p0)
}
 0x10c   : > { %459 = dma.vmem_to_hbm [thread:$0]  (%p737_p9), %s813_s20, 128, %s811_s21, %s307_s3  }
 0x10d PF: > { %s334_s5 = sand.u32 1, %s644_s9   ;;  %p868_p3 = scmp.ge.s32.totalorder %s664_s14, 2 }
 0x10e   : > { %s335_s16 = scalar_lea.sflag [#allocation4], %s334_s5 }
 0x10f   : > { %p469_p13 = pnand %p868_p3, %p744_p11 }
 0x111   : > { %p470_p5 = pneg %p469_p13 }
 0x113   : > { %639 = dma.done.wait (%p470_p5), %s335_s16, 128  }
 0x114   : > { %641 = vsyncadd (%p470_p5), %s335_s16, 4294967168  ;;  %s21_s14 = sadd.s32 1, %s664_s14   ;;  %s869_s9 = smov %s648_s10 }
 0x115   : > { %p18_p12 = scmp.ge.s32.totalorder %s21_s14, 4   ;;  %s870_s10 = smov %s652_s11 }
 0x116   : > { %s871_s11 = smov %s742_s23  ;;  %s872_s12 = smov %s660_s13 }
 0x117   : > { %s873_s13 = smov %s875_s17  ;;  %20 = sbr.rel (!%p18_p12) target bundleno = 8 (0x8), region = 86 }
 0x11c   :  { %340 = vsyncpa [#allocation3], 1 }
 0x11d   :  { %342 = vsyncpa [#allocation3 + $0x1], 1 }
 0x11e   :  { %343 = vsyncpa [#allocation6], 1 }
 0x11f   :  { %345 = vsyncpa [#allocation6 + $0x1], 1 }
 0x120   :  { %346 = vsyncpa [#allocation4], 1 }
 0x121   :  { %348 = vsyncpa [#allocation4 + $0x1], 1 }

</bundles_post_ra>
